<compile_context>
chip_gen: v6e
topology: v6e:2x2x1
jax: 0.10.0
libtpu: 0.0.40
codegen_flags: <defaults>
</compile_context>

<pallas_src>
import functools

import jax
import jax.numpy as jnp
from jax.experimental import pallas as pl
from jax.experimental.pallas import tpu as pltpu


def _cdiv(a, b):
    return (a + b - 1) // b


def _round_up(x, m):
    return _cdiv(x, m) * m


def _sublane_multiple(dtype):
    # f32/i32 -> 8, bf16/f16 -> 16, int8/bool/fp8 -> 32 (packed-tile sublane rule).
    return max(8, 32 // jnp.dtype(dtype).itemsize)


def _ccc_loss_kernel(x_ref, y_ref, m_ref, out_ref,
                     sx, sy, sxx, syy, sxy, sm,
                     *, t_true, t_tile, cw, n_groups, group, need_mask):
    k = pl.program_id(1)

    # ---- init: zero the persistent lane-partial accumulators at the first T tile.
    @pl.when(k == 0)
    def _init():
        z = jnp.zeros(sx.shape, jnp.float32)
        sx[...] = z
        sy[...] = z
        sxx[...] = z
        syy[...] = z
        sxy[...] = z
        sm[...] = z

    if need_mask:
        k_off = k * t_tile                                            # scalar i32
        lane_ids = jax.lax.broadcasted_iota(jnp.int32, (1, cw), 1)    # hoisted once

    def _load_chunk(chunk_idx):
        start = chunk_idx * cw
        if not isinstance(start, int):
            start = pl.multiple_of(start, cw)
        sl = pl.ds(start, cw)
        xs = x_ref[:, sl].astype(jnp.float32)
        ys = y_ref[:, sl].astype(jnp.float32)
        ms = m_ref[:, sl].astype(jnp.float32)
        if need_mask:
            # Zero out-of-range lanes: the partial last T tile reads garbage there
            # (possibly NaN), so all three operands must be selected, not just ms.
            valid = (k_off + chunk_idx * cw + lane_ids) < t_true
            zero = jnp.float32(0.0)
            xs = jnp.where(valid, xs, zero)
            ys = jnp.where(valid, ys, zero)
            ms = jnp.where(valid, ms, zero)
        xs = xs * ms          # x = inputs * mask
        ys = ys * ms          # y = target * mask
        return xs, ys, ms

    def _group_body(g, carry):
        # Two-level accumulation: sum `group` chunks in vreg temporaries, then do
        # a single read-modify-write of each VMEM accumulator per group.
        base = g * group
        xs, ys, ms = _load_chunk(base)
        tx, ty, tm = xs, ys, ms
        txx, tyy, txy = xs * xs, ys * ys, xs * ys
        for c in range(1, group):
            xs, ys, ms = _load_chunk(base + c)
            tx = tx + xs
            ty = ty + ys
            tm = tm + ms
            txx = txx + xs * xs
            tyy = tyy + ys * ys
            txy = txy + xs * ys
        sx[...] += tx
        sy[...] += ty
        sm[...] += tm
        sxx[...] += txx
        syy[...] += tyy
        sxy[...] += txy
        return carry

    if n_groups == 1:
        _group_body(0, None)
    else:
        jax.lax.fori_loop(0, n_groups, _group_body, None)

    # ---- finalize: one cross-lane reduction per quantity, then the CCC algebra.
    @pl.when(k == pl.num_programs(1) - 1)
    def _finalize():
        inv_t = jnp.float32(1.0 / t_true)  # divide by the TRUE sequence length

        sum_x = jnp.sum(sx[...], axis=1, keepdims=True)     # (b_tile, 1)
        sum_y = jnp.sum(sy[...], axis=1, keepdims=True)
        sum_xx = jnp.sum(sxx[...], axis=1, keepdims=True)
        sum_yy = jnp.sum(syy[...], axis=1, keepdims=True)
        sum_xy = jnp.sum(sxy[...], axis=1, keepdims=True)
        sum_m = jnp.sum(sm[...], axis=1, keepdims=True)

        a_mean = sum_x * inv_t
        b_mean = sum_y * inv_t
        a_var = sum_xx * inv_t - a_mean * a_mean
        b_var = sum_yy * inv_t - b_mean * b_mean
        cor_ab = sum_xy * inv_t - a_mean * b_mean            # E[xy] - E[x]E[y]

        denom = a_var + b_var + jnp.square(a_mean - b_mean) + jnp.float32(1e-9)
        ccc = 2.0 * cor_ab / denom

        out_ref[:, 0:1] = (1.0 - ccc) * sum_m                # per-row numerator
        out_ref[:, 1:2] = sum_m                              # per-row mask sum


def ccc_loss(inputs, target, mask, *, b_tile=None, t_tile=None):
    """inputs/target/mask: (B, T) arrays (any float/int dtype). Returns scalar f32 loss."""
    assert inputs.shape == target.shape == mask.shape
    assert inputs.ndim == 2
    B, T = inputs.shape

    rm = max(_sublane_multiple(a.dtype) for a in (inputs, target, mask))

    # ---- B tiling: <=128 rows, aligned to the packed sublane multiple; keep at
    #      least two B blocks when possible so both v7x TensorCores get grid work.
    if b_tile is None:
        if B >= 2 * rm:
            b_tile = min(128, rm * _cdiv(_cdiv(B, 2), rm))
        else:
            b_tile = B
    else:
        b_tile = _round_up(b_tile, rm)
    if b_tile >= B:
        b_tile = B          # single full-B block (block == full dim, alignment rule waived)

    # ---- T tiling: lane dim is a multiple of 128 (or the full T when T < 128).
    T_CAP = 4096            # (128, 4096) f32 = 2 MiB / input / pipeline buffer
    if t_tile is None:
        t_tile = T_CAP
    if t_tile >= T:
        t_tile = T if T < 128 else _round_up(T, 128)
    else:
        t_tile = max(128, _round_up(t_tile, 128))

    cw = min(128, t_tile)               # lane width of the VMEM accumulators
    n_chunks = t_tile // cw
    group = 4 if n_chunks % 4 == 0 else (2 if n_chunks % 2 == 0 else 1)
    n_groups = n_chunks // group

    nb = _cdiv(B, b_tile)
    nk = _cdiv(T, t_tile)
    need_mask = (T % t_tile) != 0       # partial last T tile -> zero its garbage lanes

    kernel = functools.partial(
        _ccc_loss_kernel, t_true=T, t_tile=t_tile, cw=cw,
        n_groups=n_groups, group=group, need_mask=need_mask)

    itemsizes = sum(jnp.dtype(a.dtype).itemsize for a in (inputs, target, mask))
    vmem_need = 2 * b_tile * t_tile * itemsizes + 6 * b_tile * cw * 4 + (2 << 20)
    # >= 32 MiB helps v5e (16 MiB scoped default); <= 48 MiB keeps v7x (64 MiB
    # physical VMEM) fully double-buffered with headroom.
    vmem_limit = int(min(max(vmem_need, 32 << 20), 48 << 20))

    out = pl.pallas_call(
        kernel,
        grid=(nb, nk),
        in_specs=[
            pl.BlockSpec((b_tile, t_tile), lambda b, k: (b, k)),
            pl.BlockSpec((b_tile, t_tile), lambda b, k: (b, k)),
            pl.BlockSpec((b_tile, t_tile), lambda b, k: (b, k)),
        ],
        out_specs=pl.BlockSpec((b_tile, 2), lambda b, k: (b, 0)),
        out_shape=jax.ShapeDtypeStruct((B, 2), jnp.float32),
        scratch_shapes=[pltpu.VMEM((b_tile, cw), jnp.float32) for _ in range(6)],
        compiler_params=pltpu.CompilerParams(
            dimension_semantics=("parallel", "arbitrary"),
            vmem_limit_bytes=vmem_limit,
        ),
        cost_estimate=pl.CostEstimate(
            flops=11 * B * T + 32 * B,
            transcendentals=0,
            bytes_accessed=B * T * itemsizes + B * 2 * 4,
        ),
    )(inputs, target, mask)

    # loss = sum((1-ccc)*mask_row_sum / T) / sum(mask) * T == sum(num) / sum(msum)
    return jnp.sum(out[:, 0]) / jnp.sum(out[:, 1])


def ccc_loss_ref(inputs, target, mask):
    """Pure-JAX reference mirroring the PyTorch forward (default config), f32 math."""
    inputs = inputs.astype(jnp.float32)
    target = target.astype(jnp.float32)
    mask = mask.astype(jnp.float32)
    x = inputs * mask
    y = target * mask
    a_mean = jnp.mean(x, axis=1)
    b_mean = jnp.mean(y, axis=1)
    a_var = jnp.mean(jnp.square(x), axis=1) - jnp.square(a_mean)
    b_var = jnp.mean(jnp.square(y), axis=1) - jnp.square(b_mean)
    cor_ab = jnp.mean((x - a_mean[:, None]) * (y - b_mean[:, None]), axis=1)
    ccc = 2 * cor_ab / (a_var + b_var + jnp.square(a_mean - b_mean) + 1e-9)
    length = target.shape[1]
    loss = jnp.sum((1 - ccc) * jnp.sum(mask, axis=1) / length)
    loss = loss / jnp.sum(mask) * length
    return loss


if __name__ == "__main__":
    key = jax.random.PRNGKey(0)
    k1, k2, k3, k4, k5, k6 = jax.random.split(key, 6)

    # Case 1: tiny f32 shape, single grid step, T < 128 (full-dim lane block).
    B, T = 4, 16
    inputs = jax.random.normal(k1, (B, T), dtype=jnp.float32)
    target = jax.random.normal(k2, (B, T), dtype=jnp.float32)
    lengths = jnp.array([16, 12, 8, 14], dtype=jnp.int32)
    mask = (jnp.arange(T)[None, :] < lengths[:, None]).astype(jnp.float32)

    loss = jax.block_until_ready(ccc_loss(inputs, target, mask))
    loss_ref = ccc_loss_ref(inputs, target, mask)
    assert jnp.allclose(loss, loss_ref, atol=1e-5, rtol=1e-5), (loss, loss_ref)

    # Case 2: native narrow dtypes (bf16 x/y, int8 mask) streamed without any host
    # upcast/pad; two T steps with a partial (iota-masked) last tile; full-B block.
    B2, T2 = 10, 200
    inputs2 = jax.random.normal(k3, (B2, T2), dtype=jnp.float32).astype(jnp.bfloat16)
    target2 = jax.random.normal(k4, (B2, T2), dtype=jnp.float32).astype(jnp.bfloat16)
    lengths2 = jnp.array([200, 150, 64, 199, 32, 128, 7, 180, 96, 200], dtype=jnp.int32)
    mask2 = (jnp.arange(T2)[None, :] < lengths2[:, None]).astype(jnp.int8)

    loss2 = jax.block_until_ready(ccc_loss(inputs2, target2, mask2, t_tile=128))
    loss2_ref = ccc_loss_ref(inputs2, target2, mask2)
    assert jnp.allclose(loss2, loss2_ref, atol=1e-4, rtol=1e-4), (loss2, loss2_ref)

    # Case 3: multiple blocks on both axes with partial edge blocks in B and T,
    # bf16 inputs + f32 mask, grouped (4-chunk) two-level accumulation.
    B3, T3 = 40, 600
    inputs3 = jax.random.normal(k5, (B3, T3), dtype=jnp.float32).astype(jnp.bfloat16)
    target3 = jax.random.normal(k6, (B3, T3), dtype=jnp.float32).astype(jnp.bfloat16)
    lengths3 = (jnp.arange(B3, dtype=jnp.int32) * 13) % T3 + 17
    mask3 = (jnp.arange(T3)[None, :] < lengths3[:, None]).astype(jnp.float32)

    loss3 = jax.block_until_ready(ccc_loss(inputs3, target3, mask3, t_tile=512))
    loss3_ref = ccc_loss_ref(inputs3, target3, mask3)
    assert jnp.allclose(loss3, loss3_ref, atol=1e-4, rtol=1e-4), (loss3, loss3_ref)

    # Case 4: same data, default tiling -> one 640-wide T tile streamed through the
    # fori_loop chunk path (dynamic lane offsets) with edge masking.
    loss4 = jax.block_until_ready(ccc_loss(inputs3, target3, mask3))
    assert jnp.allclose(loss4, loss3_ref, atol=1e-4, rtol=1e-4), (loss4, loss3_ref)

    print("KERNEL_OK")
</pallas_src>

<mosaic_0001>
module attributes {stable_mosaic.version = 11 : i64} {
  func.func @_ccc_loss_kernel(%arg0: i32, %arg1: i32, %arg2: memref<4x16xf32, #tpu.memory_space<vmem>>, %arg3: memref<4x16xf32, #tpu.memory_space<vmem>>, %arg4: memref<4x16xf32, #tpu.memory_space<vmem>>, %arg5: memref<4x2xf32, #tpu.memory_space<vmem>>, %arg6: memref<4x16xf32, #tpu.memory_space<vmem>>, %arg7: memref<4x16xf32, #tpu.memory_space<vmem>>, %arg8: memref<4x16xf32, #tpu.memory_space<vmem>>, %arg9: memref<4x16xf32, #tpu.memory_space<vmem>>, %arg10: memref<4x16xf32, #tpu.memory_space<vmem>>, %arg11: memref<4x16xf32, #tpu.memory_space<vmem>>) attributes {dimension_semantics = [#tpu.dimension_semantics<parallel>, #tpu.dimension_semantics<arbitrary>], iteration_bounds = array<i64: 1, 1>, scalar_prefetch = 0 : i64, scratch_operands = 6 : i64, tpu.core_type = #tpu.core_type<tc>, window_params = [{transform_indices = @transform_0, window_bounds = array<i64: 4, 16>}, {transform_indices = @transform_1, window_bounds = array<i64: 4, 16>}, {transform_indices = @transform_2, window_bounds = array<i64: 4, 16>}, {transform_indices = @transform_3, window_bounds = array<i64: 4, 2>}]} {
    %c0_i32 = arith.constant 0 : i32
    %0 = arith.cmpi eq, %arg1, %c0_i32 : i32
    %1 = arith.extui %0 : i1 to i32
    %c0_i32_0 = arith.constant 0 : i32
    %2 = arith.cmpi ne, %1, %c0_i32_0 : i32
    scf.if %2 {
      %cst = arith.constant 0.000000e+00 : f32
      %32 = vector.broadcast %cst : f32 to vector<4x16xf32>
      %c0_32 = arith.constant 0 : index
      %c0_33 = arith.constant 0 : index
      %33 = vector.load %arg6[%c0_32, %c0_33] : memref<4x16xf32, #tpu.memory_space<vmem>>, vector<4x16xf32>
      tpu.vector_store %arg6[%c0_32, %c0_33], %32 {strides = array<i32>} : memref<4x16xf32, #tpu.memory_space<vmem>>, vector<4x16xf32>,
      %c0_34 = arith.constant 0 : index
      %c0_35 = arith.constant 0 : index
      %34 = vector.load %arg7[%c0_34, %c0_35] : memref<4x16xf32, #tpu.memory_space<vmem>>, vector<4x16xf32>
      tpu.vector_store %arg7[%c0_34, %c0_35], %32 {strides = array<i32>} : memref<4x16xf32, #tpu.memory_space<vmem>>, vector<4x16xf32>,
      %c0_36 = arith.constant 0 : index
      %c0_37 = arith.constant 0 : index
      %35 = vector.load %arg8[%c0_36, %c0_37] : memref<4x16xf32, #tpu.memory_space<vmem>>, vector<4x16xf32>
      tpu.vector_store %arg8[%c0_36, %c0_37], %32 {strides = array<i32>} : memref<4x16xf32, #tpu.memory_space<vmem>>, vector<4x16xf32>,
      %c0_38 = arith.constant 0 : index
      %c0_39 = arith.constant 0 : index
      %36 = vector.load %arg9[%c0_38, %c0_39] : memref<4x16xf32, #tpu.memory_space<vmem>>, vector<4x16xf32>
      tpu.vector_store %arg9[%c0_38, %c0_39], %32 {strides = array<i32>} : memref<4x16xf32, #tpu.memory_space<vmem>>, vector<4x16xf32>,
      %c0_40 = arith.constant 0 : index
      %c0_41 = arith.constant 0 : index
      %37 = vector.load %arg10[%c0_40, %c0_41] : memref<4x16xf32, #tpu.memory_space<vmem>>, vector<4x16xf32>
      tpu.vector_store %arg10[%c0_40, %c0_41], %32 {strides = array<i32>} : memref<4x16xf32, #tpu.memory_space<vmem>>, vector<4x16xf32>,
      %c0_42 = arith.constant 0 : index
      %c0_43 = arith.constant 0 : index
      %38 = vector.load %arg11[%c0_42, %c0_43] : memref<4x16xf32, #tpu.memory_space<vmem>>, vector<4x16xf32>
      tpu.vector_store %arg11[%c0_42, %c0_43], %32 {strides = array<i32>} : memref<4x16xf32, #tpu.memory_space<vmem>>, vector<4x16xf32>,
    } else {
    }
    %c0 = arith.constant 0 : index
    %c0_1 = arith.constant 0 : index
    %3 = vector.load %arg2[%c0, %c0_1] : memref<4x16xf32, #tpu.memory_space<vmem>>, vector<4x16xf32>
    %c0_2 = arith.constant 0 : index
    %c0_3 = arith.constant 0 : index
    %4 = vector.load %arg3[%c0_2, %c0_3] : memref<4x16xf32, #tpu.memory_space<vmem>>, vector<4x16xf32>
    %c0_4 = arith.constant 0 : index
    %c0_5 = arith.constant 0 : index
    %5 = vector.load %arg4[%c0_4, %c0_5] : memref<4x16xf32, #tpu.memory_space<vmem>>, vector<4x16xf32>
    %6 = arith.mulf %3, %5 : vector<4x16xf32>
    %7 = arith.mulf %4, %5 : vector<4x16xf32>
    %8 = arith.mulf %6, %6 : vector<4x16xf32>
    %9 = arith.mulf %7, %7 : vector<4x16xf32>
    %10 = arith.mulf %6, %7 : vector<4x16xf32>
    %c0_6 = arith.constant 0 : index
    %c0_7 = arith.constant 0 : index
    %11 = vector.load %arg6[%c0_6, %c0_7] : memref<4x16xf32, #tpu.memory_space<vmem>>, vector<4x16xf32>
    %12 = arith.addf %11, %6 : vector<4x16xf32>
    %c0_8 = arith.constant 0 : index
    %c0_9 = arith.constant 0 : index
    %13 = vector.load %arg6[%c0_8, %c0_9] : memref<4x16xf32, #tpu.memory_space<vmem>>, vector<4x16xf32>
    tpu.vector_store %arg6[%c0_8, %c0_9], %12 {strides = array<i32>} : memref<4x16xf32, #tpu.memory_space<vmem>>, vector<4x16xf32>,
    %c0_10 = arith.constant 0 : index
    %c0_11 = arith.constant 0 : index
    %14 = vector.load %arg7[%c0_10, %c0_11] : memref<4x16xf32, #tpu.memory_space<vmem>>, vector<4x16xf32>
    %15 = arith.addf %14, %7 : vector<4x16xf32>
    %c0_12 = arith.constant 0 : index
    %c0_13 = arith.constant 0 : index
    %16 = vector.load %arg7[%c0_12, %c0_13] : memref<4x16xf32, #tpu.memory_space<vmem>>, vector<4x16xf32>
    tpu.vector_store %arg7[%c0_12, %c0_13], %15 {strides = array<i32>} : memref<4x16xf32, #tpu.memory_space<vmem>>, vector<4x16xf32>,
    %c0_14 = arith.constant 0 : index
    %c0_15 = arith.constant 0 : index
    %17 = vector.load %arg11[%c0_14, %c0_15] : memref<4x16xf32, #tpu.memory_space<vmem>>, vector<4x16xf32>
    %18 = arith.addf %17, %5 : vector<4x16xf32>
    %c0_16 = arith.constant 0 : index
    %c0_17 = arith.constant 0 : index
    %19 = vector.load %arg11[%c0_16, %c0_17] : memref<4x16xf32, #tpu.memory_space<vmem>>, vector<4x16xf32>
    tpu.vector_store %arg11[%c0_16, %c0_17], %18 {strides = array<i32>} : memref<4x16xf32, #tpu.memory_space<vmem>>, vector<4x16xf32>,
    %c0_18 = arith.constant 0 : index
    %c0_19 = arith.constant 0 : index
    %20 = vector.load %arg8[%c0_18, %c0_19] : memref<4x16xf32, #tpu.memory_space<vmem>>, vector<4x16xf32>
    %21 = arith.addf %20, %8 : vector<4x16xf32>
    %c0_20 = arith.constant 0 : index
    %c0_21 = arith.constant 0 : index
    %22 = vector.load %arg8[%c0_20, %c0_21] : memref<4x16xf32, #tpu.memory_space<vmem>>, vector<4x16xf32>
    tpu.vector_store %arg8[%c0_20, %c0_21], %21 {strides = array<i32>} : memref<4x16xf32, #tpu.memory_space<vmem>>, vector<4x16xf32>,
    %c0_22 = arith.constant 0 : index
    %c0_23 = arith.constant 0 : index
    %23 = vector.load %arg9[%c0_22, %c0_23] : memref<4x16xf32, #tpu.memory_space<vmem>>, vector<4x16xf32>
    %24 = arith.addf %23, %9 : vector<4x16xf32>
    %c0_24 = arith.constant 0 : index
    %c0_25 = arith.constant 0 : index
    %25 = vector.load %arg9[%c0_24, %c0_25] : memref<4x16xf32, #tpu.memory_space<vmem>>, vector<4x16xf32>
    tpu.vector_store %arg9[%c0_24, %c0_25], %24 {strides = array<i32>} : memref<4x16xf32, #tpu.memory_space<vmem>>, vector<4x16xf32>,
    %c0_26 = arith.constant 0 : index
    %c0_27 = arith.constant 0 : index
    %26 = vector.load %arg10[%c0_26, %c0_27] : memref<4x16xf32, #tpu.memory_space<vmem>>, vector<4x16xf32>
    %27 = arith.addf %26, %10 : vector<4x16xf32>
    %c0_28 = arith.constant 0 : index
    %c0_29 = arith.constant 0 : index
    %28 = vector.load %arg10[%c0_28, %c0_29] : memref<4x16xf32, #tpu.memory_space<vmem>>, vector<4x16xf32>
    tpu.vector_store %arg10[%c0_28, %c0_29], %27 {strides = array<i32>} : memref<4x16xf32, #tpu.memory_space<vmem>>, vector<4x16xf32>,
    %c0_i32_30 = arith.constant 0 : i32
    %29 = arith.cmpi eq, %arg1, %c0_i32_30 : i32
    %30 = arith.extui %29 : i1 to i32
    %c0_i32_31 = arith.constant 0 : i32
    %31 = arith.cmpi ne, %30, %c0_i32_31 : i32
    scf.if %31 {
      %c0_32 = arith.constant 0 : index
      %c0_33 = arith.constant 0 : index
      %32 = vector.load %arg6[%c0_32, %c0_33] : memref<4x16xf32, #tpu.memory_space<vmem>>, vector<4x16xf32>
      %cst = arith.constant dense<0.000000e+00> : vector<4xf32>
      %33 = vector.multi_reduction <add>, %32, %cst [1] : vector<4x16xf32> to vector<4xf32>
      %34 = vector.shape_cast %33 : vector<4xf32> to vector<4x1xf32>
      %c0_34 = arith.constant 0 : index
      %c0_35 = arith.constant 0 : index
      %35 = vector.load %arg7[%c0_34, %c0_35] : memref<4x16xf32, #tpu.memory_space<vmem>>, vector<4x16xf32>
      %cst_36 = arith.constant dense<0.000000e+00> : vector<4xf32>
      %36 = vector.multi_reduction <add>, %35, %cst_36 [1] : vector<4x16xf32> to vector<4xf32>
      %37 = vector.shape_cast %36 : vector<4xf32> to vector<4x1xf32>
      %c0_37 = arith.constant 0 : index
      %c0_38 = arith.constant 0 : index
      %38 = vector.load %arg8[%c0_37, %c0_38] : memref<4x16xf32, #tpu.memory_space<vmem>>, vector<4x16xf32>
      %cst_39 = arith.constant dense<0.000000e+00> : vector<4xf32>
      %39 = vector.multi_reduction <add>, %38, %cst_39 [1] : vector<4x16xf32> to vector<4xf32>
      %40 = vector.shape_cast %39 : vector<4xf32> to vector<4x1xf32>
      %c0_40 = arith.constant 0 : index
      %c0_41 = arith.constant 0 : index
      %41 = vector.load %arg9[%c0_40, %c0_41] : memref<4x16xf32, #tpu.memory_space<vmem>>, vector<4x16xf32>
      %cst_42 = arith.constant dense<0.000000e+00> : vector<4xf32>
      %42 = vector.multi_reduction <add>, %41, %cst_42 [1] : vector<4x16xf32> to vector<4xf32>
      %43 = vector.shape_cast %42 : vector<4xf32> to vector<4x1xf32>
      %c0_43 = arith.constant 0 : index
      %c0_44 = arith.constant 0 : index
      %44 = vector.load %arg10[%c0_43, %c0_44] : memref<4x16xf32, #tpu.memory_space<vmem>>, vector<4x16xf32>
      %cst_45 = arith.constant dense<0.000000e+00> : vector<4xf32>
      %45 = vector.multi_reduction <add>, %44, %cst_45 [1] : vector<4x16xf32> to vector<4xf32>
      %46 = vector.shape_cast %45 : vector<4xf32> to vector<4x1xf32>
      %c0_46 = arith.constant 0 : index
      %c0_47 = arith.constant 0 : index
      %47 = vector.load %arg11[%c0_46, %c0_47] : memref<4x16xf32, #tpu.memory_space<vmem>>, vector<4x16xf32>
      %cst_48 = arith.constant dense<0.000000e+00> : vector<4xf32>
      %48 = vector.multi_reduction <add>, %47, %cst_48 [1] : vector<4x16xf32> to vector<4xf32>
      %49 = vector.shape_cast %48 : vector<4xf32> to vector<4x1xf32>
      %cst_49 = arith.constant 6.250000e-02 : f32
      %50 = vector.broadcast %cst_49 : f32 to vector<4x1xf32>
      %51 = arith.mulf %34, %50 : vector<4x1xf32>
      %cst_50 = arith.constant 6.250000e-02 : f32
      %52 = vector.broadcast %cst_50 : f32 to vector<4x1xf32>
      %53 = arith.mulf %37, %52 : vector<4x1xf32>
      %cst_51 = arith.constant 6.250000e-02 : f32
      %54 = vector.broadcast %cst_51 : f32 to vector<4x1xf32>
      %55 = arith.mulf %40, %54 : vector<4x1xf32>
      %56 = arith.mulf %51, %51 : vector<4x1xf32>
      %57 = arith.subf %55, %56 : vector<4x1xf32>
      %cst_52 = arith.constant 6.250000e-02 : f32
      %58 = vector.broadcast %cst_52 : f32 to vector<4x1xf32>
      %59 = arith.mulf %43, %58 : vector<4x1xf32>
      %60 = arith.mulf %53, %53 : vector<4x1xf32>
      %61 = arith.subf %59, %60 : vector<4x1xf32>
      %cst_53 = arith.constant 6.250000e-02 : f32
      %62 = vector.broadcast %cst_53 : f32 to vector<4x1xf32>
      %63 = arith.mulf %46, %62 : vector<4x1xf32>
      %64 = arith.mulf %51, %53 : vector<4x1xf32>
      %65 = arith.subf %63, %64 : vector<4x1xf32>
      %66 = arith.addf %57, %61 : vector<4x1xf32>
      %67 = arith.subf %51, %53 : vector<4x1xf32>
      %68 = arith.mulf %67, %67 : vector<4x1xf32>
      %69 = arith.addf %66, %68 : vector<4x1xf32>
      %cst_54 = arith.constant 9.99999971E-10 : f32
      %70 = vector.broadcast %cst_54 : f32 to vector<4x1xf32>
      %71 = arith.addf %69, %70 : vector<4x1xf32>
      %cst_55 = arith.constant 2.000000e+00 : f32
      %72 = vector.broadcast %cst_55 : f32 to vector<4x1xf32>
      %73 = arith.mulf %72, %65 : vector<4x1xf32>
      %74 = arith.divf %73, %71 : vector<4x1xf32>
      %cst_56 = arith.constant 1.000000e+00 : f32
      %75 = vector.broadcast %cst_56 : f32 to vector<4x1xf32>
      %76 = arith.subf %75, %74 : vector<4x1xf32>
      %77 = arith.mulf %76, %49 : vector<4x1xf32>
      %c0_57 = arith.constant 0 : index
      %c0_58 = arith.constant 0 : index
      %78 = vector.load %arg5[%c0_57, %c0_58] : memref<4x2xf32, #tpu.memory_space<vmem>>, vector<4x1xf32>
      tpu.vector_store %arg5[%c0_57, %c0_58], %77 {strides = array<i32>} : memref<4x2xf32, #tpu.memory_space<vmem>>, vector<4x1xf32>,
      %c0_59 = arith.constant 0 : index
      %c1 = arith.constant 1 : index
      %79 = vector.load %arg5[%c0_59, %c1] : memref<4x2xf32, #tpu.memory_space<vmem>>, vector<4x1xf32>
      tpu.vector_store %arg5[%c0_59, %c1], %49 {strides = array<i32>} : memref<4x2xf32, #tpu.memory_space<vmem>>, vector<4x1xf32>,
    } else {
    }
    return
  }
  func.func @transform_0(%arg0: i32, %arg1: i32) -> (i32, i32) {
    %c0_i32 = arith.constant 0 : i32
    return %arg0, %arg1 : i32, i32
  }
  func.func @transform_1(%arg0: i32, %arg1: i32) -> (i32, i32) {
    %c0_i32 = arith.constant 0 : i32
    return %arg0, %arg1 : i32, i32
  }
  func.func @transform_2(%arg0: i32, %arg1: i32) -> (i32, i32) {
    %c0_i32 = arith.constant 0 : i32
    return %arg0, %arg1 : i32, i32
  }
  func.func @transform_3(%arg0: i32, %arg1: i32) -> (i32, i32) {
    %c0_i32 = arith.constant 0 : i32
    %c0_i32_0 = arith.constant 0 : i32
    return %arg0, %c0_i32 : i32, i32
  }
}

</mosaic_0001>

<bundles_post_ra>
// kernel: tpu_custom_call.1
= control target key start
LH: loop header
LB: loop body
LE: loop exit
PB: predicated region body
PF: predicated region fallthrough
CT: control target
= control target key end

     0   :  { %8 = vsyncpa [#allocation9], 0  ;;  %s272_s0 = inlined_call_operand.hbm [shape: f32[4,16], index: 0, kind: input, shape index: {}]   ;;  %s273_s1 = inlined_call_operand.hbm [shape: f32[4,16], index: 1, kind: input, shape index: {}]   ;;  %s274_s2 = inlined_call_operand.hbm [shape: f32[4,16], index: 2, kind: input, shape index: {}]   ;;  %s275_s3 = inlined_call_operand.vmem [shape: f32[4,2], index: 3, kind: output, shape index: {}]  }
   0x1   :  { %9 = vsyncpa [#allocation11], 0  ;;  %s215_s12 = smov [#allocation10]   ;;  %s216_s14 = smov [#allocation8]  }
   0x2   :  { %s26_s13 = sshll.u32 %s215_s12, 4  ;;  %s16_s15 = sshll.u32 %s216_s14, 4  ;;  %s27_s13 = int_to_ptr.vmem [resolvable:$true] %s26_s13  ;;  %s17_s15 = int_to_ptr.vmem [resolvable:$true] %s16_s15 }
   0x3   :  { %s159_s16 = scalar_lea.vmem %s27_s13, 64  ;;  %p164_p1 = scmp.lt.s32.totalorder %s27_s13, %s27_s13 }
   0x4   :  { %p160_p0 = scmp.ne.s32.totalorder %s27_s13, %s159_s16  ;;  %p165_p2 = scmp.lt.s32.totalorder %s159_s16, %s159_s16 }
   0x6   :  { %p166_p3 = por %p165_p2, %p164_p1 }
   0x8   :  { %p167_p4 = pnand %p166_p3, %p160_p0 }
   0xa   :  { %170 = shalt.err (!%p167_p4)
}
   0xb   :  { %29 = dma.hbm_to_vmem [thread:$0]  %s273_s1, 64, %s27_s13, [#allocation11]  }
   0xc   :  { %s179_s19 = scalar_lea.vmem %s17_s15, 64  ;;  %p184_p6 = scmp.lt.s32.totalorder %s17_s15, %s17_s15 }
   0xd   :  { %p180_p5 = scmp.ne.s32.totalorder %s17_s15, %s179_s19  ;;  %p185_p7 = scmp.lt.s32.totalorder %s179_s19, %s179_s19 }
   0xf   :  { %p186_p8 = por %p185_p7, %p184_p6 }
  0x11   :  { %p187_p9 = pnand %p186_p8, %p180_p5 }
  0x13   :  { %190 = shalt.err (!%p187_p9)
}
  0x14   :  { %19 = dma.hbm_to_vmem [thread:$0]  %s272_s0, 64, %s17_s15, [#allocation9]  }
  0x15   :  { %s217_s22 = smov [#allocation12]  }
  0x16   :  { %s36_s23 = sshll.u32 %s217_s22, 4  ;;  %s37_s23 = int_to_ptr.vmem [resolvable:$true] %s36_s23 }
  0x17   :  { %s199_s24 = scalar_lea.vmem %s37_s23, 64  ;;  %p204_p11 = scmp.lt.s32.totalorder %s37_s23, %s37_s23 }
  0x18   :  { %p200_p10 = scmp.ne.s32.totalorder %s37_s23, %s199_s24  ;;  %p205_p12 = scmp.lt.s32.totalorder %s199_s24, %s199_s24 }
  0x1a   :  { %p206_p13 = por %p205_p12, %p204_p11 }
  0x1c   :  { %p207_p0 = pnand %p206_p13, %p200_p10 }
  0x1e   :  { %210 = shalt.err (!%p207_p0)
}
  0x1f   :  { %39 = dma.hbm_to_vmem [thread:$0]  %s274_s2, 64, %s37_s23, [#allocation11]  }
  0x20   :  { %211 = dma.done.wait [#allocation9], 64  }
  0x21   :  { %212 = vsyncadd [#allocation9], 4294967232 }
  0x22   :  { %213 = dma.done.wait [#allocation11], 128  }
  0x23   :  { %214 = vsyncadd [#allocation11], 4294967168  ;;  %vm53_vm0 = vcmask 125952   ;;  %v218_v0 = vmov 0.0   ;;  %v60_v1 = vld [vmem:[#allocation8] sm:$0xf] }
  0x24   :  { %54 = vst.msk [vmem:[#allocation2] sm:$0xf] %vm53_vm0, %v218_v0  ;;  %55 = vst.msk [vmem:[#allocation3] sm:$0xf] %vm53_vm0, %v218_v0  ;;  %v62_v2 = vld [vmem:[#allocation12] sm:$0xf] }
  0x25   :  { %56 = vst.msk [vmem:[#allocation4] sm:$0xf] %vm53_vm0, %v218_v0  ;;  %57 = vst.msk [vmem:[#allocation5] sm:$0xf] %vm53_vm0, %v218_v0  ;;  %v61_v3 = vld [vmem:[#allocation10] sm:$0xf]  ;;  %v63_v4 = vmul.f32 %v62_v2, %v60_v1 }
  0x26   :  { %58 = vst.msk [vmem:[#allocation6] sm:$0xf] %vm53_vm0, %v218_v0  ;;  %59 = vst.msk [vmem:[#allocation7] sm:$0xf] %vm53_vm0, %v218_v0  ;;  %v64_v6 = vmul.f32 %v62_v2, %v61_v3  ;;  %vm135_vm1 = vcmask 3072   ;;  %vm137_vm2 = vcmask 11272  }
  0x27   :  { %v65_v12 = vmul.f32 %v63_v4, %v63_v4 }
  0x28   :  { %v66_v14 = vmul.f32 %v64_v6, %v64_v6  ;;  %v67_v16 = vmul.f32 %v64_v6, %v63_v4 }
  0x2b   :  { %v68_v5 = vld [vmem:[#allocation2] sm:$0xf]  ;;  %v72_v7 = vld [vmem:[#allocation3] sm:$0xf] }
  0x2c   :  { %v78_v8 = vld [vmem:[#allocation4] sm:$0xf]  ;;  %v81_v9 = vld [vmem:[#allocation5] sm:$0xf]  ;;  %v69_v11 = vadd.f32 %v68_v5, %v63_v4  ;;  %v73_v13 = vadd.f32 %v72_v7, %v64_v6 }
  0x2d   :  { %v75_v10 = vld [vmem:[#allocation7] sm:$0xf]  ;;  %v84_v15 = vld [vmem:[#allocation6] sm:$0xf]  ;;  %v79_v18 = vadd.f32 %v78_v8, %v65_v12  ;;  %v82_v19 = vadd.f32 %v81_v9, %v66_v14 }
  0x2e   :  { %v76_v17 = vadd.f32 %v75_v10, %v62_v2  ;;  %71 = vst.msk [vmem:[#allocation2] sm:$0xf] %vm53_vm0, %v69_v11  ;;  %74 = vst.msk [vmem:[#allocation3] sm:$0xf] %vm53_vm0, %v73_v13  ;;  %v85_v20 = vadd.f32 %v84_v15, %v67_v16 }
  0x2f   :  { %80 = vst.msk [vmem:[#allocation4] sm:$0xf] %vm53_vm0, %v79_v18  ;;  %83 = vst.msk [vmem:[#allocation5] sm:$0xf] %vm53_vm0, %v82_v19 }
  0x30   :  { %77 = vst.msk [vmem:[#allocation7] sm:$0xf] %vm53_vm0, %v76_v17  ;;  %86 = vst.msk [vmem:[#allocation6] sm:$0xf] %vm53_vm0, %v85_v20 }
  0x35   :  { %v90_v21 = vld [vmem:[#allocation2] sm:$0xf]  ;;  %v94_v22 = vld [vmem:[#allocation3] sm:$0xf] }
  0x36   :  { %v91_v23 = vsel %vm53_vm0, %v90_v21, 0.0  ;;  %v98_v24 = vld [vmem:[#allocation4] sm:$0xf]  ;;  %v102_v25 = vld [vmem:[#allocation5] sm:$0xf]  ;;  %v95_v27 = vsel %vm53_vm0, %v94_v22, 0.0 }
  0x37   :  { %92 = vadd.xlane.f32.xlu0 %v91_v23  ;;  %v99_v26 = vsel %vm53_vm0, %v98_v24, 0.0  ;;  %v106_v28 = vld [vmem:[#allocation6] sm:$0xf]  ;;  %v103_v29 = vsel %vm53_vm0, %v102_v25, 0.0  ;;  %v110_v30 = vld [vmem:[#allocation7] sm:$0xf] }
  0x38   :  { %100 = vadd.xlane.f32.xlu1 %v99_v26  ;;  %v107_v31 = vsel %vm53_vm0, %v106_v28, 0.0  ;;  %v111_v32 = vsel %vm53_vm0, %v110_v30, 0.0 }
  0x3b   :  { %96 = vadd.xlane.f32.xlu0 %v95_v27 }
  0x3c   :  { %104 = vadd.xlane.f32.xlu1 %v103_v29 }
  0x3f   :  { %108 = vadd.xlane.f32.xlu0 %v107_v31 }
  0x40   :  { %112 = vadd.xlane.f32.xlu1 %v111_v32 }
  0xc0   :  { %v93_v33 = vpop.xlane.xlu0 %92 }
  0xc1   :  { %v114_v34 = vmul.f32 0.0625, %v93_v33  ;;  %v101_v35 = vpop.xlane.xlu1 %100 }
  0xc2   :  { %v116_v37 = vmul.f32 0.0625, %v101_v35 }
  0xc3   :  { %v117_v38 = vmul.f32 %v114_v34, %v114_v34 }
  0xc4   :  { %v97_v36 = vpop.xlane.xlu0 %96 }
  0xc5   :  { %v115_v39 = vmul.f32 0.0625, %v97_v36  ;;  %v105_v40 = vpop.xlane.xlu1 %104  ;;  %v118_v44 = vsub.f32 %v116_v37, %v117_v38 }
  0xc6   :  { %v119_v42 = vmul.f32 0.0625, %v105_v40 }
  0xc7   :  { %v126_v41 = vsub.f32 %v114_v34, %v115_v39  ;;  %v120_v43 = vmul.f32 %v115_v39, %v115_v39  ;;  %v123_v52 = vmul.f32 %v115_v39, %v114_v34 }
  0xc8   :  { %v109_v50 = vpop.xlane.xlu0 %108 }
  0xc9   :  { %v121_v45 = vsub.f32 %v119_v42, %v120_v43  ;;  %v127_v46 = vmul.f32 %v126_v41, %v126_v41  ;;  %v122_v51 = vmul.f32 0.0625, %v109_v50  ;;  %v113_v57 = vpop.xlane.xlu1 %112 }
  0xcb   :  { %v125_v47 = vadd.f32 %v121_v45, %v118_v44  ;;  %v124_v53 = vsub.f32 %v122_v51, %v123_v52 }
  0xcd   :  { %v128_v48 = vadd.f32 %v127_v46, %v125_v47  ;;  %v130_v54 = vmul.f32 2.0, %v124_v53 }
  0xcf   :  { %v129_v49 = vadd.f32 1e-09, %v128_v48 }
  0xd1   :  { %149 = vrcp.f32 %v129_v49 }
  0xde   :  { %v150_v55 = vpop.eup %149 }
  0xdf   :  { %v132_v56 = vmul.f32 %v150_v55, %v130_v54 }
  0xe1   :  { %v133_v58 = vsub.f32 1.0, %v132_v56 }
  0xe3   :  { %v134_v59 = vmul.f32 %v133_v58, %v113_v57 }
  0xe5   :  { %136 = vst.msk [vmem:[%s275_s3] sm:$0xf] %vm135_vm1, %v134_v59 }
  0xe6   :  { %138 = vst.msk [vmem:[%s275_s3] sm:$0xf] %vm137_vm2, %v113_v57 }
  0xe7   :  { %143 = vsyncpa [#allocation9], 1 }
  0xe8   :  { %144 = vsyncpa [#allocation11], 1 }

</bundles_post_ra>
